<compile_context>
chip_gen: v5e
topology: v5e:2x2
jax: 0.10.0
libtpu: 0.0.40
codegen_flags: <defaults>
</compile_context>

<pallas_src>
import jax
import jax.numpy as jnp
from jax.experimental import pallas as pl
from jax.experimental.pallas import tpu as pltpu


# Model dims (PyTorch SubgroupClassifier defaults).
EMB, H1, H2, NC = 300, 200, 100, 5
# Lane-aligned padded *output* dims (multiples of 128).  K dims are left un-padded.
H1_P, H2_P, NC_P = 256, 128, 128

_MAX_TILE_B = 2048   # ~8 MiB total double-buffered VMEM -> fits v5e's 16 MiB default
_SPLIT_MIN_B = 512   # below this, a single full-batch tile is used


def _round_up(n, m):
    return ((n + m - 1) // m) * m


def _pick_batch_tile(B):
    """Batch tile: as big as possible (amortize ~0.35 us/grid-step), multiple of 16
    (dense bf16 sublane packing).  For large B keep an even number (>= 2) of tiles
    so both v7x TensorCores get work via the "parallel" batch axis."""
    if B <= _SPLIT_MIN_B:
        return B                                   # block == full dim -> always legal
    n_tiles = _round_up(max(2, pl.cdiv(B, _MAX_TILE_B)), 2)
    return min(_MAX_TILE_B, _round_up(pl.cdiv(B, n_tiles), 16))


def _mlp_kernel(x_ref, w1_ref, b1_ref, w2_ref, b2_ref, w3_ref, b3_ref, out_ref):
    # In-kernel cast to bf16 (no wrapper pre-pass); MXU matmuls with f32 accumulation.
    x = x_ref[...].astype(jnp.bfloat16)
    # Layer 1: Linear(300 -> 256 padded) + bias + ReLU (f32 epilogue).
    h = jnp.dot(x, w1_ref[...], preferred_element_type=jnp.float32)
    h = jnp.maximum(h + b1_ref[...], 0.0)
    # Layer 2: Linear(256 -> 128 padded) + bias + ReLU.
    h = jnp.dot(h.astype(jnp.bfloat16), w2_ref[...], preferred_element_type=jnp.float32)
    h = jnp.maximum(h + b2_ref[...], 0.0)
    # Layer 3: Linear(128 -> 128 padded; 5 real cols) + bias + ReLU (spec applies
    # ReLU to the final layer too).
    h = jnp.dot(h.astype(jnp.bfloat16), w3_ref[...], preferred_element_type=jnp.float32)
    # TODO(synk): training-mode dropout (pltpu.prng_random_bits mask) not wired in.
    out_ref[...] = jnp.maximum(h + b3_ref[...], 0.0).astype(out_ref.dtype)  # bf16 store


def init_params(key, embedding_dim=EMB, num_classes=NC, hidden_dim_1=H1, hidden_dim_2=H2):
    """Deterministic synthetic parameters (PyTorch nn.Linear init), stored [in, out]."""
    ks = jax.random.split(key, 6)

    def lin(kw, kb, fan_in, fan_out):
        bound = 1.0 / jnp.sqrt(fan_in)
        w = jax.random.uniform(kw, (fan_in, fan_out), jnp.float32, -bound, bound)
        b = jax.random.uniform(kb, (1, fan_out), jnp.float32, -bound, bound)
        return w, b

    w1, b1 = lin(ks[0], ks[1], embedding_dim, hidden_dim_1)
    w2, b2 = lin(ks[2], ks[3], hidden_dim_1, hidden_dim_2)
    w3, b3 = lin(ks[4], ks[5], hidden_dim_2, num_classes)
    return dict(w1=w1, b1=b1, w2=w2, b2=b2, w3=w3, b3=b3)


def prepare_params(params):
    """Zero-pad output dims to lane-aligned sizes; weights -> bf16, biases -> f32.

    Contraction (K) dims are NOT padded, so x streams in un-padded.  Padded weight
    rows/cols and bias lanes are exactly zero, so padded lanes stay zero through
    every ReLU and never leak into real output columns.  Call once; the padded
    params stay VMEM-resident across the whole batch grid (~0.2 MB of bf16 —
    per review, fp8 would buy nothing here).
    """
    def pad_w(w, rp, cp):
        r, c = w.shape
        return jnp.zeros((rp, cp), jnp.bfloat16).at[:r, :c].set(w.astype(jnp.bfloat16))

    def pad_b(b, cp):
        c = b.shape[-1]
        return jnp.zeros((1, cp), jnp.float32).at[:, :c].set(
            b.reshape(1, c).astype(jnp.float32))

    return dict(
        w1=pad_w(params["w1"], EMB,  H1_P), b1=pad_b(params["b1"], H1_P),
        w2=pad_w(params["w2"], H1_P, H2_P), b2=pad_b(params["b2"], H2_P),
        w3=pad_w(params["w3"], H2_P, NC_P), b3=pad_b(params["b3"], NC_P),
    )


def subgroup_classifier_forward(x, pp):
    """x: [B, EMB] float32 (or bf16 for ~half the input HBM traffic).
    pp: output of prepare_params().  Returns [B, NC] float32 (post-ReLU) outputs."""
    B = x.shape[0]
    tile_b = _pick_batch_tile(B)
    n_tiles = pl.cdiv(B, tile_b)

    def resident(shape):
        # Weights/biases: same block every grid step -> loaded once, VMEM-resident.
        # (pipeline_mode=pl.Buffered(1) would also drop the redundant 2nd buffer /
        #  prologue DMAs; left at the default for wide JAX-version compatibility.)
        return pl.BlockSpec(shape, lambda i: (0, 0))

    out_p = pl.pallas_call(
        _mlp_kernel,
        out_shape=jax.ShapeDtypeStruct((B, NC_P), jnp.bfloat16),
        grid=(n_tiles,),
        in_specs=[
            # x streamed over the batch; last dim = full 300, so no pre-pad pass.
            # A partial trailing block is safe: rows are independent and stores to
            # out-of-range rows are masked.
            pl.BlockSpec((tile_b, EMB), lambda i: (i, 0)),
            resident((EMB,  H1_P)), resident((1, H1_P)),
            resident((H1_P, H2_P)), resident((1, H2_P)),
            resident((H2_P, NC_P)), resident((1, NC_P)),
        ],
        out_specs=pl.BlockSpec((tile_b, NC_P), lambda i: (i, 0)),
        compiler_params=pltpu.CompilerParams(dimension_semantics=("parallel",)),
    )(x, pp["w1"], pp["b1"], pp["w2"], pp["b2"], pp["w3"], pp["b3"])

    # Slice the 5 real classes and return f32 (kernel writeback was bf16).
    return out_p[:, :NC].astype(jnp.float32)


def reference_forward(x, params):
    """Pure-JAX reference with matching bf16-input / f32-accumulate numerics."""
    bf = lambda a: a.astype(jnp.bfloat16).astype(jnp.float32)
    h = jnp.maximum(bf(x) @ bf(params["w1"]) + params["b1"], 0.0)
    h = jnp.maximum(bf(h) @ bf(params["w2"]) + params["b2"], 0.0)
    return jnp.maximum(bf(h) @ bf(params["w3"]) + params["b3"], 0.0)


if __name__ == "__main__":
    key = jax.random.PRNGKey(0)
    k_x, k_p = jax.random.split(key)

    B = 8
    x = jax.random.normal(k_x, (B, EMB), dtype=jnp.float32)
    params = init_params(k_p)
    padded = prepare_params(params)

    out = subgroup_classifier_forward(x, padded)
    out = jax.block_until_ready(out)

    ref = reference_forward(x, params)
    assert out.shape == (B, NC), out.shape
    # Kernel writes back bf16 -> allow ~one bf16 ulp of relative error vs f32 ref.
    assert jnp.allclose(out, ref, atol=1e-2, rtol=1e-2), (
        f"mismatch vs reference: max abs err = {jnp.max(jnp.abs(out - ref))}")

    print("KERNEL_OK")
</pallas_src>

<mosaic_0001>
module attributes {stable_mosaic.version = 11 : i64} {
  func.func @_mlp_kernel(%arg0: i32, %arg1: memref<8x300xf32, #tpu.memory_space<vmem>>, %arg2: memref<300x256xbf16, #tpu.memory_space<vmem>>, %arg3: memref<1x256xf32, #tpu.memory_space<vmem>>, %arg4: memref<256x128xbf16, #tpu.memory_space<vmem>>, %arg5: memref<1x128xf32, #tpu.memory_space<vmem>>, %arg6: memref<128x128xbf16, #tpu.memory_space<vmem>>, %arg7: memref<1x128xf32, #tpu.memory_space<vmem>>, %arg8: memref<8x128xbf16, #tpu.memory_space<vmem>>) attributes {dimension_semantics = [#tpu.dimension_semantics<parallel>], iteration_bounds = array<i64: 1>, scalar_prefetch = 0 : i64, scratch_operands = 0 : i64, tpu.core_type = #tpu.core_type<tc>, window_params = [{transform_indices = @transform_0, window_bounds = array<i64: 8, 300>}, {pipeline_mode = #tpu.pipeline_mode<synchronous>, transform_indices = @transform_1, window_bounds = array<i64: 300, 256>}, {pipeline_mode = #tpu.pipeline_mode<synchronous>, transform_indices = @transform_2, window_bounds = array<i64: 1, 256>}, {pipeline_mode = #tpu.pipeline_mode<synchronous>, transform_indices = @transform_3, window_bounds = array<i64: 256, 128>}, {pipeline_mode = #tpu.pipeline_mode<synchronous>, transform_indices = @transform_4, window_bounds = array<i64: 1, 128>}, {pipeline_mode = #tpu.pipeline_mode<synchronous>, transform_indices = @transform_5, window_bounds = array<i64: 128, 128>}, {pipeline_mode = #tpu.pipeline_mode<synchronous>, transform_indices = @transform_6, window_bounds = array<i64: 1, 128>}, {transform_indices = @transform_7, window_bounds = array<i64: 8, 128>}]} {
    %c0 = arith.constant 0 : index
    %c0_0 = arith.constant 0 : index
    %0 = vector.load %arg1[%c0, %c0_0] : memref<8x300xf32, #tpu.memory_space<vmem>>, vector<8x300xf32>
    %1 = arith.truncf %0 : vector<8x300xf32> to vector<8x300xbf16>
    %c0_1 = arith.constant 0 : index
    %c0_2 = arith.constant 0 : index
    %2 = vector.load %arg2[%c0_1, %c0_2] : memref<300x256xbf16, #tpu.memory_space<vmem>>, vector<300x256xbf16>
    %cst = arith.constant dense<0.000000e+00> : vector<8x256xf32>
    %3 = tpu.matmul %1, %2, %cst {dimension_numbers = #tpu.dot_dimension_numbers<[1], [0], [0], [1], [0, 0, 1, 1], [], []>} : vector<8x300xbf16>, vector<300x256xbf16>, vector<8x256xf32> -> vector<8x256xf32>
    %c0_3 = arith.constant 0 : index
    %c0_4 = arith.constant 0 : index
    %4 = vector.load %arg3[%c0_3, %c0_4] : memref<1x256xf32, #tpu.memory_space<vmem>>, vector<1x256xf32>
    %5 = vector.broadcast %4 : vector<1x256xf32> to vector<8x256xf32>
    %6 = arith.addf %3, %5 : vector<8x256xf32>
    %cst_5 = arith.constant 0.000000e+00 : f32
    %7 = vector.broadcast %cst_5 : f32 to vector<8x256xf32>
    %8 = arith.maximumf %6, %7 : vector<8x256xf32>
    %9 = arith.truncf %8 : vector<8x256xf32> to vector<8x256xbf16>
    %c0_6 = arith.constant 0 : index
    %c0_7 = arith.constant 0 : index
    %10 = vector.load %arg4[%c0_6, %c0_7] : memref<256x128xbf16, #tpu.memory_space<vmem>>, vector<256x128xbf16>
    %cst_8 = arith.constant dense<0.000000e+00> : vector<8x128xf32>
    %11 = tpu.matmul %9, %10, %cst_8 {dimension_numbers = #tpu.dot_dimension_numbers<[1], [0], [0], [1], [0, 0, 1, 1], [], []>} : vector<8x256xbf16>, vector<256x128xbf16>, vector<8x128xf32> -> vector<8x128xf32>
    %c0_9 = arith.constant 0 : index
    %c0_10 = arith.constant 0 : index
    %12 = vector.load %arg5[%c0_9, %c0_10] : memref<1x128xf32, #tpu.memory_space<vmem>>, vector<1x128xf32>
    %13 = vector.broadcast %12 : vector<1x128xf32> to vector<8x128xf32>
    %14 = arith.addf %11, %13 : vector<8x128xf32>
    %cst_11 = arith.constant 0.000000e+00 : f32
    %15 = vector.broadcast %cst_11 : f32 to vector<8x128xf32>
    %16 = arith.maximumf %14, %15 : vector<8x128xf32>
    %17 = arith.truncf %16 : vector<8x128xf32> to vector<8x128xbf16>
    %c0_12 = arith.constant 0 : index
    %c0_13 = arith.constant 0 : index
    %18 = vector.load %arg6[%c0_12, %c0_13] : memref<128x128xbf16, #tpu.memory_space<vmem>>, vector<128x128xbf16>
    %cst_14 = arith.constant dense<0.000000e+00> : vector<8x128xf32>
    %19 = tpu.matmul %17, %18, %cst_14 {dimension_numbers = #tpu.dot_dimension_numbers<[1], [0], [0], [1], [0, 0, 1, 1], [], []>} : vector<8x128xbf16>, vector<128x128xbf16>, vector<8x128xf32> -> vector<8x128xf32>
    %c0_15 = arith.constant 0 : index
    %c0_16 = arith.constant 0 : index
    %20 = vector.load %arg7[%c0_15, %c0_16] : memref<1x128xf32, #tpu.memory_space<vmem>>, vector<1x128xf32>
    %21 = vector.broadcast %20 : vector<1x128xf32> to vector<8x128xf32>
    %22 = arith.addf %19, %21 : vector<8x128xf32>
    %cst_17 = arith.constant 0.000000e+00 : f32
    %23 = vector.broadcast %cst_17 : f32 to vector<8x128xf32>
    %24 = arith.maximumf %22, %23 : vector<8x128xf32>
    %25 = arith.truncf %24 : vector<8x128xf32> to vector<8x128xbf16>
    %c0_18 = arith.constant 0 : index
    %c0_19 = arith.constant 0 : index
    %26 = vector.load %arg8[%c0_18, %c0_19] : memref<8x128xbf16, #tpu.memory_space<vmem>>, vector<8x128xbf16>
    tpu.vector_store %arg8[%c0_18, %c0_19], %25 {strides = array<i32>} : memref<8x128xbf16, #tpu.memory_space<vmem>>, vector<8x128xbf16>,
    return
  }
  func.func @transform_0(%arg0: i32) -> (i32, i32) {
    %c0_i32 = arith.constant 0 : i32
    %c0_i32_0 = arith.constant 0 : i32
    return %arg0, %c0_i32 : i32, i32
  }
  func.func @transform_1(%arg0: i32) -> (i32, i32) {
    %c0_i32 = arith.constant 0 : i32
    %c0_i32_0 = arith.constant 0 : i32
    %c0_i32_1 = arith.constant 0 : i32
    return %c0_i32, %c0_i32_0 : i32, i32
  }
  func.func @transform_2(%arg0: i32) -> (i32, i32) {
    %c0_i32 = arith.constant 0 : i32
    %c0_i32_0 = arith.constant 0 : i32
    %c0_i32_1 = arith.constant 0 : i32
    return %c0_i32, %c0_i32_0 : i32, i32
  }
  func.func @transform_3(%arg0: i32) -> (i32, i32) {
    %c0_i32 = arith.constant 0 : i32
    %c0_i32_0 = arith.constant 0 : i32
    %c0_i32_1 = arith.constant 0 : i32
    return %c0_i32, %c0_i32_0 : i32, i32
  }
  func.func @transform_4(%arg0: i32) -> (i32, i32) {
    %c0_i32 = arith.constant 0 : i32
    %c0_i32_0 = arith.constant 0 : i32
    %c0_i32_1 = arith.constant 0 : i32
    return %c0_i32, %c0_i32_0 : i32, i32
  }
  func.func @transform_5(%arg0: i32) -> (i32, i32) {
    %c0_i32 = arith.constant 0 : i32
    %c0_i32_0 = arith.constant 0 : i32
    %c0_i32_1 = arith.constant 0 : i32
    return %c0_i32, %c0_i32_0 : i32, i32
  }
  func.func @transform_6(%arg0: i32) -> (i32, i32) {
    %c0_i32 = arith.constant 0 : i32
    %c0_i32_0 = arith.constant 0 : i32
    %c0_i32_1 = arith.constant 0 : i32
    return %c0_i32, %c0_i32_0 : i32, i32
  }
  func.func @transform_7(%arg0: i32) -> (i32, i32) {
    %c0_i32 = arith.constant 0 : i32
    %c0_i32_0 = arith.constant 0 : i32
    return %arg0, %c0_i32 : i32, i32
  }
}

</mosaic_0001>

<bundles_post_ra>
// kernel: tpu_custom_call.1
= control target key start
LH: loop header
LB: loop body
LE: loop exit
PB: predicated region body
PF: predicated region fallthrough
CT: control target
= control target key end

     0   :  { %12 = vsyncpa [#allocation3], 0  ;;  %s1248_s0 = inlined_call_operand.hbm [shape: f32[8,300], index: 0, kind: input, shape index: {}]   ;;  %s1249_s1 = inlined_call_operand.hbm [shape: bf16[300,256], index: 1, kind: input, shape index: {}]   ;;  %s1250_s2 = inlined_call_operand.hbm [shape: f32[1,256], index: 2, kind: input, shape index: {}]   ;;  %s1251_s3 = inlined_call_operand.hbm [shape: bf16[256,128], index: 3, kind: input, shape index: {}]   ;;  %s1252_s4 = inlined_call_operand.vmem [shape: f32[1,128], index: 4, kind: input, shape index: {}]   ;;  %s1253_s5 = inlined_call_operand.hbm [shape: bf16[128,128], index: 5, kind: input, shape index: {}]   ;;  %s1254_s6 = inlined_call_operand.vmem [shape: f32[1,128], index: 6, kind: input, shape index: {}]   ;;  %s1255_s7 = inlined_call_operand.hbm [shape: bf16[8,128], index: 7, kind: output, shape index: {}]  }
   0x1   :  { %13 = vsyncpa [#allocation6], 0 }
   0x2   :  { %14 = vsyncpa [#allocation9], 0  ;;  %s31_s26 = sshll.u32 %s1249_s1, 4  ;;  %s32_s26 = int_to_ptr.hbm [resolvable:$true] %s31_s26 }
   0x3   :  { %15 = vsyncpa [#allocation4], 0  ;;  %s1172_s27 = smov [#allocation5]   ;;  %s55_s8 = sshll.u32 %s1251_s3, 4  ;;  %s56_s8 = int_to_ptr.hbm [resolvable:$true] %s55_s8 }
   0x4   :  { %s33_s28 = sshll.u32 %s1172_s27, 4  ;;  %s1173_s9 = smov 128   ;;  %s34_s28 = int_to_ptr.vmem [resolvable:$true] %s33_s28 }
   0x5   :  { %s1174_s10 = smov 8   ;;  %s1175_s11 = smov [#allocation8]  }
   0x6   :  { %39 = dma.hbm_to_vmem [thread:$0]  %s32_s26, 4864, %s34_s28, [#allocation6], %s1173_s9, %s1173_s9, %s1174_s10  }
   0x7   :  { %s57_s12 = sshll.u32 %s1175_s11, 4  ;;  %s1176_s13 = smov 64   ;;  %s58_s12 = int_to_ptr.vmem [resolvable:$true] %s57_s12 }
   0x8   :  { %s1177_s14 = smov 4   ;;  %s21_s16 = sshll.u32 %s1248_s0, 4  ;;  %s22_s16 = int_to_ptr.hbm [resolvable:$true] %s21_s16 }
   0x9   :  { %63 = dma.hbm_to_vmem [thread:$0]  %s56_s8, 2048, %s58_s12, [#allocation9], %s1176_s13, %s1176_s13, %s1177_s14  }
   0xa   :  { %s1178_s17 = smov [#allocation2]   ;;  %s45_s20 = sshll.u32 %s1250_s2, 4  ;;  %s46_s20 = int_to_ptr.hbm [resolvable:$true] %s45_s20 }
   0xb   :  { %s23_s18 = sshll.u32 %s1178_s17, 4  ;;  %s1179_s21 = smov [#allocation7]   ;;  %s24_s18 = int_to_ptr.vmem [resolvable:$true] %s23_s18 }
   0xc   :  { %26 = dma.hbm_to_vmem [thread:$0]  %s22_s16, 384, %s24_s18, [#allocation3]  }
   0xd   :  { %s47_s22 = sshll.u32 %s1179_s21, 4  ;;  %s70_s25 = sshll.u32 %s1253_s5, 4  ;;  %s48_s22 = int_to_ptr.vmem [resolvable:$true] %s47_s22  ;;  %s71_s25 = int_to_ptr.hbm [resolvable:$true] %s70_s25 }
   0xe   :  { %50 = dma.hbm_to_vmem [thread:$0]  %s46_s20, 32, %s48_s22, [#allocation6]  }
   0xf   :  { %s1180_s0 = smov [#allocation10]  }
  0x10   :  { %s72_s26 = sshll.u32 %s1180_s0, 4  ;;  %s73_s26 = int_to_ptr.vmem [resolvable:$true] %s72_s26 }
  0x11   :  { %78 = dma.hbm_to_vmem [thread:$0]  %s71_s25, 1024, %s73_s26, [#allocation9], %s1176_s13, %s1176_s13, %s1177_s14  }
  0x12   :  { %1164 = dma.done.wait [#allocation3], 384  }
  0x13   :  { %1165 = vsyncadd [#allocation3], 4294966912 }
  0x14   :  { %1166 = dma.done.wait [#allocation6], 4896  }
  0x15   :  { %1167 = vsyncadd [#allocation6], 4294962400 }
  0x16   :  { %1168 = dma.done.wait [#allocation9], 3072  }
  0x17   :  { %1169 = vsyncadd [#allocation9], 4294964224  ;;  %v754_v0 = vld [vmem:[#allocation5 + $0x70] sm:$0xf]  ;;  %v961_v1 = vld [vmem:[#allocation5 + $0x74] sm:$0xf0] }
  0x18   :  { %v818_v2 = vld [vmem:[#allocation5 + $0xf0] sm:$0xf]  ;;  %v755_v3 = vor.u32 %v961_v1, %v754_v0  ;;  %v977_v4 = vld [vmem:[#allocation5 + $0xf4] sm:$0xf0]  ;;  %v746_v5 = vld [vmem:[#allocation5 + $0x60] sm:$0xf] }
  0x19   :  { %v959_v6 = vld [vmem:[#allocation5 + $0x64] sm:$0xf0]  ;;  %v819_v7 = vor.u32 %v977_v4, %v818_v2  ;;  %v810_v8 = vld [vmem:[#allocation5 + $0xe0] sm:$0xf]  ;;  %v738_v12 = vld [vmem:[#allocation5 + $0x50] sm:$0xf] }
  0x1a   :  { %v975_v9 = vld [vmem:[#allocation5 + $0xe4] sm:$0xf0]  ;;  %351 = vmatpush.bf16.msra.mxu0 %v755_v3  ;;  %v747_v10 = vor.u32 %v959_v6, %v746_v5  ;;  %v957_v13 = vld [vmem:[#allocation5 + $0x54] sm:$0xf0]  ;;  %v802_v14 = vld [vmem:[#allocation5 + $0xd0] sm:$0xf] }
  0x1b   :  { %364 = vmatpush.bf16.msra.mxu1 %v819_v7  ;;  %v811_v11 = vor.u32 %v975_v9, %v810_v8  ;;  %v973_v15 = vld [vmem:[#allocation5 + $0xd4] sm:$0xf0]  ;;  %v960_v16 = vld [vmem:[#allocation5 + $0x74] sm:$0xf]  ;;  %v756_v17 = vld [vmem:[#allocation5 + $0x78] sm:$0xf0]  ;;  %v739_v20 = vor.u32 %v957_v13, %v738_v12 }
  0x1c   :  { %v759_v18 = vor.u32 %v960_v16, %v756_v17  ;;  %v976_v19 = vld [vmem:[#allocation5 + $0xf4] sm:$0xf]  ;;  %v730_v21 = vld [vmem:[#allocation5 + $0x40] sm:$0xf]  ;;  %v955_v22 = vld [vmem:[#allocation5 + $0x44] sm:$0xf0]  ;;  %v803_v24 = vor.u32 %v973_v15, %v802_v14 }
  0x1d   :  { %v820_v23 = vld [vmem:[#allocation5 + $0xf8] sm:$0xf0]  ;;  %v794_v25 = vld [vmem:[#allocation5 + $0xc0] sm:$0xf]  ;;  %v958_v27 = vld [vmem:[#allocation5 + $0x64] sm:$0xf]  ;;  %v731_v35 = vor.u32 %v955_v22, %v730_v21 }
  0x1e   :  { %352 = vmatpush.bf16.msra.mxu0 %v747_v10  ;;  %390 = vmatpush.bf16.msra.mxu3 %v759_v18  ;;  %v823_v26 = vor.u32 %v976_v19, %v820_v23  ;;  %v748_v28 = vld [vmem:[#allocation5 + $0x68] sm:$0xf0]  ;;  %v971_v29 = vld [vmem:[#allocation5 + $0xc4] sm:$0xf0]  ;;  %v974_v31 = vld [vmem:[#allocation5 + $0xe4] sm:$0xf] }
  0x1f   :  { %365 = vmatpush.bf16.msra.mxu1 %v811_v11  ;;  %v751_v30 = vor.u32 %v958_v27, %v748_v28  ;;  %v812_v32 = vld [vmem:[#allocation5 + $0xe8] sm:$0xf0]  ;;  %v956_v34 = vld [vmem:[#allocation5 + $0x54] sm:$0xf]  ;;  %v722_v36 = vld [vmem:[#allocation5 + $0x30] sm:$0xf]  ;;  %v795_v39 = vor.u32 %v971_v29, %v794_v25 }
  0x20   :  { %403 = vmatpush.bf16.msra.mxu2 %v823_v26  ;;  %v815_v33 = vor.u32 %v974_v31, %v812_v32  ;;  %v953_v37 = vld [vmem:[#allocation5 + $0x34] sm:$0xf0]  ;;  %v740_v38 = vld [vmem:[#allocation5 + $0x58] sm:$0xf0]  ;;  %v786_v40 = vld [vmem:[#allocation5 + $0xb0] sm:$0xf] }
  0x21   :  { %v743_v41 = vor.u32 %v956_v34, %v740_v38  ;;  %v972_v42 = vld [vmem:[#allocation5 + $0xd4] sm:$0xf]  ;;  %v804_v43 = vld [vmem:[#allocation5 + $0xd8] sm:$0xf0]  ;;  %v969_v44 = vld [vmem:[#allocation5 + $0xb4] sm:$0xf0]  ;;  %v723_v48 = vor.u32 %v953_v37, %v722_v36 }
  0x22   :  { %353 = vmatpush.bf16.msra.mxu0 %v739_v20  ;;  %391 = vmatpush.bf16.msra.mxu3 %v751_v30  ;;  %v954_v45 = vld [vmem:[#allocation5 + $0x44] sm:$0xf]  ;;  %v732_v46 = vld [vmem:[#allocation5 + $0x48] sm:$0xf0]  ;;  %v807_v47 = vor.u32 %v972_v42, %v804_v43  ;;  %v787_v51 = vor.u32 %v969_v44, %v786_v40  ;;  %v714_v52 = vld [vmem:[#allocation5 + $0x20] sm:$0xf] }
  0x23   :  { %366 = vmatpush.bf16.msra.mxu1 %v803_v24  ;;  %v970_v49 = vld [vmem:[#allocation5 + $0xc4] sm:$0xf]  ;;  %v796_v50 = vld [vmem:[#allocation5 + $0xc8] sm:$0xf0]  ;;  %v951_v53 = vld [vmem:[#allocation5 + $0x24] sm:$0xf0]  ;;  %v735_v55 = vor.u32 %v954_v45, %v732_v46 }
  0x24   :  { %404 = vmatpush.bf16.msra.mxu2 %v815_v33  ;;  %v778_v54 = vld [vmem:[#allocation5 + $0xa0] sm:$0xf]  ;;  %v967_v56 = vld [vmem:[#allocation5 + $0xa4] sm:$0xf0]  ;;  %v952_v57 = vld [vmem:[#allocation5 + $0x34] sm:$0xf]  ;;  %v799_v59 = vor.u32 %v970_v49, %v796_v50  ;;  %v715_v60 = vor.u32 %v951_v53, %v714_v52 }
  0x25   :  { %v724_v58 = vld [vmem:[#allocation5 + $0x38] sm:$0xf0]  ;;  %v968_v61 = vld [vmem:[#allocation5 + $0xb4] sm:$0xf]  ;;  %v779_v63 = vor.u32 %v967_v56, %v778_v54  ;;  %v706_v0 = vld [vmem:[#allocation5 + $0x10] sm:$0xf] }
  0x26   :  { %354 = vmatpush.bf16.msra.mxu0 %v731_v35  ;;  %392 = vmatpush.bf16.msra.mxu3 %v743_v41  ;;  %v788_v62 = vld [vmem:[#allocation5 + $0xb8] sm:$0xf0]  ;;  %v949_v1 = vld [vmem:[#allocation5 + $0x14] sm:$0xf0]  ;;  %v770_v2 = vld [vmem:[#allocation5 + $0x90] sm:$0xf]  ;;  %v727_v3 = vor.u32 %v952_v57, %v724_v58 }
  0x27   :  { %367 = vmatpush.bf16.msra.mxu1 %v795_v39  ;;  %v965_v4 = vld [vmem:[#allocation5 + $0x94] sm:$0xf0]  ;;  %v950_v5 = vld [vmem:[#allocation5 + $0x24] sm:$0xf]  ;;  %v716_v6 = vld [vmem:[#allocation5 + $0x28] sm:$0xf0]  ;;  %v791_v9 = vor.u32 %v968_v61, %v788_v62  ;;  %v707_v10 = vor.u32 %v949_v1, %v706_v0 }
  0x28   :  { %405 = vmatpush.bf16.msra.mxu2 %v807_v47  ;;  %v842_v7 = vld [vmem:[#allocation5 + $0x120] sm:$0xf]  ;;  %v983_v8 = vld [vmem:[#allocation5 + $0x124] sm:$0x30]  ;;  %v966_v11 = vld [vmem:[#allocation5 + $0xa4] sm:$0xf]  ;;  %v771_v13 = vor.u32 %v965_v4, %v770_v2  ;;  %v719_v16 = vor.u32 %v950_v5, %v716_v6 }
  0x29   :  { %v780_v12 = vld [vmem:[#allocation5 + $0xa8] sm:$0xf0]  ;;  %v698_v14 = vld [vmem:[#allocation5] sm:$0xf]  ;;  %v947_v15 = vld [vmem:[#allocation5 + $0x4] sm:$0xf0]  ;;  %v843_v20 = vor.u32 %v983_v8, %v842_v7 }
  0x2a   :  { %355 = vmatpush.bf16.msra.mxu0 %v723_v48  ;;  %393 = vmatpush.bf16.msra.mxu3 %v735_v55  ;;  %v762_v17 = vld [vmem:[#allocation5 + $0x80] sm:$0xf]  ;;  %v963_v18 = vld [vmem:[#allocation5 + $0x84] sm:$0xf0]  ;;  %vm344_vm0 = vcmask 1045504   ;;  %v783_v21 = vor.u32 %v966_v11, %v780_v12  ;;  %v699_v24 = vor.u32 %v947_v15, %v698_v14  ;;  %v103_v28 = vld [vmem:[#allocation2 + $0x8] sm:$0xff] }
  0x2b   :  { %368 = vmatpush.bf16.msra.mxu1 %v787_v51  ;;  %v102_v19 = vld [vmem:[#allocation2] sm:$0xff]  ;;  %v948_v22 = vld [vmem:[#allocation5 + $0x14] sm:$0xf]  ;;  %v708_v23 = vld [vmem:[#allocation5 + $0x18] sm:$0xf0]  ;;  %v763_v27 = vor.u32 %v963_v18, %v762_v17  ;;  %v346_v29 = vsel %vm344_vm0, %v843_v20, 0  ;;  %v106_v39 = vpack.c.bf16 %v103_v28, %v103_v28 }
  0x2c   :  { %406 = vmatpush.bf16.msra.mxu2 %v799_v59  ;;  %v964_v25 = vld [vmem:[#allocation5 + $0x94] sm:$0xf]  ;;  %v772_v26 = vld [vmem:[#allocation5 + $0x98] sm:$0xf0]  ;;  %v834_v30 = vld [vmem:[#allocation5 + $0x110] sm:$0xf]  ;;  %v711_v32 = vor.u32 %v948_v22, %v708_v23  ;;  %v105_v33 = vpack.c.bf16 %v102_v19, %v102_v19 }
  0x2d   :  { %v981_v31 = vld [vmem:[#allocation5 + $0x114] sm:$0xf0]  ;;  %v982_v34 = vld [vmem:[#allocation5 + $0x124] sm:$0xf]  ;;  %v775_v35 = vor.u32 %v964_v25, %v772_v26  ;;  %v700_v37 = vld [vmem:[#allocation5 + $0x8] sm:$0xf0] }
  0x2e   :  { %356 = vmatpush.bf16.msra.mxu0 %v715_v60  ;;  %394 = vmatpush.bf16.msra.mxu3 %v727_v3  ;;  %v946_v36 = vld [vmem:[#allocation5 + $0x4] sm:$0xf]  ;;  %v844_v38 = vld [vmem:[#allocation5 + $0x128] sm:$0x30]  ;;  %v835_v42 = vor.u32 %v981_v31, %v834_v30  ;;  %v826_v43 = vld [vmem:[#allocation5 + $0x100] sm:$0xf] }
  0x2f   :  { %369 = vmatpush.bf16.msra.mxu1 %v779_v63  ;;  %v962_v40 = vld [vmem:[#allocation5 + $0x84] sm:$0xf]  ;;  %v764_v41 = vld [vmem:[#allocation5 + $0x88] sm:$0xf0]  ;;  %v979_v44 = vld [vmem:[#allocation5 + $0x104] sm:$0xf0]  ;;  %v703_v45 = vor.u32 %v946_v36, %v700_v37  ;;  %v847_v46 = vor.u32 %v982_v34, %v844_v38 }
  0x30   :  { %407 = vmatpush.bf16.msra.mxu2 %v791_v9  ;;  %v767_v47 = vor.u32 %v962_v40, %v764_v41  ;;  %v991_v48 = vld [vmem:[#allocation8 + $0x38] sm:$0xff]  ;;  %v827_v49 = vor.u32 %v979_v44, %v826_v43  ;;  %v980_v51 = vld [vmem:[#allocation5 + $0x114] sm:$0xf]  ;;  %v836_v52 = vld [vmem:[#allocation5 + $0x118] sm:$0xf0]  ;;  %vm340_vm1 = vcmask 359424  }
  0x31   :  { %v349_v50 = vsel %vm344_vm0, %v847_v46, 0  ;;  %v990_v53 = vld [vmem:[#allocation8 + $0x30] sm:$0xff]  ;;  %v839_v54 = vor.u32 %v980_v51, %v836_v52  ;;  %v828_v56 = vld [vmem:[#allocation5 + $0x108] sm:$0xf0]  ;;  %v104_v57 = vld [vmem:[#allocation2 + $0x10] sm:$0xff]  ;;  %s1181_s29 = smov [#allocation11]  }
  0x32   :  { %357 = vmatpush.bf16.msra.mxu0 %v707_v10  ;;  %395 = vmatpush.bf16.msra.mxu3 %v719_v16  ;;  %v978_v55 = vld [vmem:[#allocation5 + $0x104] sm:$0xf]  ;;  %v107_v59 = vpack.c.bf16 %v104_v57, %v104_v57  ;;  %v989_v60 = vld [vmem:[#allocation8 + $0x28] sm:$0xff]  ;;  %v988_v61 = vld [vmem:[#allocation8 + $0x20] sm:$0xff]  ;;  %s682_s30 = sshll.u32 %s1181_s29, 4  ;;  %s684_s10 = sshll.u32 %s1255_s7, 4  ;;  %s683_s30 = int_to_ptr.vmem [resolvable:$true] %s682_s30  ;;  %s685_s10 = int_to_ptr.hbm [resolvable:$true] %s684_s10 }
  0x33   :  { %370 = vmatpush.bf16.msra.mxu1 %v771_v13  ;;  %v831_v58 = vor.u32 %v978_v55, %v828_v56  ;;  %v987_v62 = vld [vmem:[#allocation8 + $0x18] sm:$0xff]  ;;  %v986_v0 = vld [vmem:[#allocation8 + $0x10] sm:$0xff]  ;;  %v985_v2 = vld [vmem:[#allocation8 + $0x8] sm:$0xff] }
  0x34   :  { %408 = vmatpush.bf16.msra.mxu2 %v783_v21  ;;  %v999_v63 = vld [vmem:[#allocation8 + $0x78] sm:$0xff]  ;;  %v998_v1 = vld [vmem:[#allocation8 + $0x70] sm:$0xff]  ;;  %v997_v3 = vld [vmem:[#allocation8 + $0x68] sm:$0xff] }
  0x35   :  { %v984_v4 = vld [vmem:[#allocation8] sm:$0xff]  ;;  %v995_v6 = vld [vmem:[#allocation8 + $0x58] sm:$0xff]  ;;  %v994_v7 = vld [vmem:[#allocation8 + $0x50] sm:$0xff] }
  0x36   :  { %358 = vmatpush.bf16.msra.mxu0 %v699_v24  ;;  %396 = vmatpush.bf16.msra.mxu3 %v711_v32  ;;  %v996_v5 = vld [vmem:[#allocation8 + $0x60] sm:$0xff]  ;;  %v993_v8 = vld [vmem:[#allocation8 + $0x48] sm:$0xff]  ;;  %v146_v12 = vld [vmem:[#allocation7] sm:$0x3] }
  0x37   :  { %371 = vmatpush.bf16.msra.mxu1 %v763_v27  ;;  %v992_v11 = vld [vmem:[#allocation8 + $0x40] sm:$0xff]  ;;  %v148_v13 = vperm.slane %v146_v12, 0  ;;  %v1007_v15 = vld [vmem:[#allocation10 + $0x38] sm:$0xff]  ;;  %v149_v26 = vperm.slane %v146_v12, 1  ;;  %v1006_v36 = vld [vmem:[#allocation10 + $0x30] sm:$0xff] }
  0x38   :  { %409 = vmatpush.bf16.msra.mxu2 %v775_v35  ;;  %v1005_v37 = vld [vmem:[#allocation10 + $0x28] sm:$0xff]  ;;  %v1004_v38 = vld [vmem:[#allocation10 + $0x20] sm:$0xff]  ;;  %v1002_v40 = vld [vmem:[#allocation10 + $0x10] sm:$0xff] }
  0x39   :  { %359 = vmatmul.bf16.vlgmr.msra.gmra.mxu0 %v105_v33  ;;  %v1001_v41 = vld [vmem:[#allocation10 + $0x8] sm:$0xff]  ;;  %v1019_v52 = vld [vmem:[%s1254_s6] ss:$0 sm:$0xff] }
  0x3a   :  { %382 = vmatpush.bf16.msrb.mxu0 %v346_v29  ;;  %372 = vmatmul.bf16.vlgmr.msra.gmra.mxu1 %v106_v39 }
  0x3b   :  { %565 = vmatpush.bf16.msrb.mxu1 %v991_v48  ;;  %397 = vmatpush.bf16.msra.mxu3 %v703_v45  ;;  %v1018_v45 = vld [vmem:[%s1252_s4] ss:$0 sm:$0xff] }
  0x3c   :  { %410 = vmatpush.bf16.msra.mxu2 %v767_v47 }
  0x3e   :  { %383 = vmatpush.bf16.msrb.mxu0 %v835_v42  ;;  %398 = vmatmul.bf16.vlgmr.msra.gmra.mxu3 %v105_v33  ;;  %v1000_v42 = vld [vmem:[#allocation10] sm:$0xff] }
  0x3f   :  { %411 = vmatmul.bf16.vlgmr.msra.gmra.mxu2 %v106_v39  ;;  %566 = vmatpush.bf16.msrb.mxu1 %v990_v53  ;;  %v1003_v39 = vld [vmem:[#allocation10 + $0x18] sm:$0xff] }
  0x40   :  { %578 = vmatpush.bf16.msrb.mxu3 %v999_v63  ;;  %661 = vmatpush.bf16.msrb.mxu2 %v1007_v15 }
  0x42   :  { %384 = vmatpush.bf16.msrb.mxu0 %v827_v49 }
  0x43   :  { %567 = vmatpush.bf16.msrb.mxu1 %v989_v60 }
  0x44   :  { %579 = vmatpush.bf16.msrb.mxu3 %v998_v1  ;;  %662 = vmatpush.bf16.msrb.mxu2 %v1006_v36 }
  0x46   :  { %421 = vmatpush.bf16.msra.mxu0 %v349_v50 }
  0x47   :  { %568 = vmatpush.bf16.msrb.mxu1 %v988_v61 }
  0x48   :  { %580 = vmatpush.bf16.msrb.mxu3 %v997_v3  ;;  %663 = vmatpush.bf16.msrb.mxu2 %v1005_v37 }
  0x49   :  { %848 = vmatmul.msk.bf16.vlgmr.msrb.gmra.mxu0 %vm340_vm1, %v107_v59 }
  0x4a   :  { %422 = vmatpush.bf16.msra.mxu0 %v839_v54 }
  0x4b   :  { %569 = vmatpush.bf16.msrb.mxu1 %v987_v62 }
  0x4c   :  { %581 = vmatpush.bf16.msrb.mxu3 %v996_v5  ;;  %664 = vmatpush.bf16.msrb.mxu2 %v1004_v38 }
  0x4e   :  { %423 = vmatpush.bf16.msra.mxu0 %v831_v58 }
  0x4f   :  { %570 = vmatpush.bf16.msrb.mxu1 %v986_v0 }
  0x50   :  { %582 = vmatpush.bf16.msrb.mxu3 %v995_v6  ;;  %665 = vmatpush.bf16.msrb.mxu2 %v1003_v39 }
  0x53   :  { %571 = vmatpush.bf16.msrb.mxu1 %v985_v2 }
  0x54   :  { %583 = vmatpush.bf16.msrb.mxu3 %v994_v7  ;;  %666 = vmatpush.bf16.msrb.mxu2 %v1002_v40 }
  0x57   :  { %572 = vmatpush.bf16.msrb.mxu1 %v984_v4 }
  0x58   :  { %584 = vmatpush.bf16.msrb.mxu3 %v993_v8  ;;  %667 = vmatpush.bf16.msrb.mxu2 %v1001_v41 }
  0x59   :  { %849 = vmatmul.msk.bf16.vlgmr.msra.gmra.mxu0 %vm340_vm1, %v107_v59 }
  0x5c   :  { %585 = vmatpush.bf16.msrb.mxu3 %v992_v11  ;;  %668 = vmatpush.bf16.msrb.mxu2 %v1000_v42 }
  0xb6   :  { %v360_v9 = vpop.f32.mrf.mxu0 }
  0xb7   :  { %v373_v10 = vpop.f32.mrf.mxu1  ;;  %v361_v17 = vadd.f32 %v360_v9, %v148_v13 }
  0xb9   :  { %v374_v20 = vadd.f32 %v373_v10, %v361_v17 }
  0xbe   :  { %v362_v14 = vpop.f32.mrf.mxu0 }
  0xbf   :  { %v375_v16 = vpop.f32.mrf.mxu1 }
  0xc1   :  { %v399_v18 = vpop.f32.mrf.mxu3 }
  0xc2   :  { %v412_v19 = vpop.f32.mrf.mxu2  ;;  %v400_v29 = vadd.f32 %v399_v18, %v149_v26 }
  0xc4   :  { %v413_v30 = vadd.f32 %v412_v19, %v400_v29 }
  0xc6   :  { %v386_v21 = vpop.f32.mrf.mxu0 }
  0xc7   :  { %v387_v22 = vadd.f32 %v386_v21, %v374_v20 }
  0xc9   :  { %v429_v23 = vmax.f32 %v387_v22, 0.0  ;;  %v401_v24 = vpop.f32.mrf.mxu3 }
  0xca   :  { %v414_v27 = vpop.f32.mrf.mxu2 }
  0xcb   :  { %v431_v25 = vpack.c.bf16 %v429_v23, %v429_v23 }
  0xcd   :  { %573 = vmatmul.bf16.vlgmr.msrb.gmra.mxu1 %v431_v25 }
  0xce   :  { %v388_v28 = vpop.f32.mrf.mxu0 }
  0xd6   :  { %v425_v31 = vpop.f32.mrf.mxu0 }
  0xd7   :  { %v426_v32 = vadd.f32 %v425_v31, %v413_v30 }
  0xd9   :  { %v430_v33 = vmax.f32 %v426_v32, 0.0 }
  0xdb   :  { %v432_v34 = vpack.c.bf16 %v430_v33, %v430_v33 }
  0xdd   :  { %586 = vmatmul.bf16.vlgmr.msrb.gmra.mxu3 %v432_v34 }
  0xde   :  { %v427_v35 = vpop.f32.mrf.mxu0 }
 0x14a   :  { %v574_v43 = vpop.f32.mrf.mxu1 }
 0x14b   :  { %v575_v46 = vadd.f32 %v1018_v45, %v574_v43 }
 0x152   :  { %v576_v44 = vpop.f32.mrf.mxu1 }
 0x160   :  { %v587_v47 = vpop.f32.mrf.mxu3 }
 0x161   :  { %v588_v48 = vadd.f32 %v587_v47, %v575_v46 }
 0x163   :  { %v591_v49 = vmax.f32 %v588_v48, 0.0 }
 0x165   :  { %v592_v50 = vpack.c.bf16 %v591_v49, %v591_v49 }
 0x167   :  { %669 = vmatmul.bf16.vlgmr.msrb.gmra.mxu2 %v592_v50 }
 0x168   :  { %v589_v51 = vpop.f32.mrf.mxu3 }
 0x1ea   :  { %v670_v53 = vpop.f32.mrf.mxu2 }
 0x1eb   :  { %v671_v54 = vadd.f32 %v1019_v52, %v670_v53 }
 0x1ed   :  { %v674_v55 = vmax.f32 %v671_v54, 0.0 }
 0x1ef   :  { %v675_v56 = vpack.c.bf16 %v674_v55, %v674_v55 }
 0x1f1   :  { %676 = vst [vmem:[#allocation11] sm:$0xf] %v675_v56 }
 0x1f2   :  { %v672_v57 = vpop.f32.mrf.mxu2  ;;  %687 = dma.vmem_to_hbm [thread:$0]  %s683_s30, 64, %s685_s10, [#allocation4]  }
 0x1f3   :  { %1170 = dma.done.wait [#allocation4], 64  }
 0x1f4   :  { %1171 = vsyncadd [#allocation4], 4294967232 }
 0x1f5   :  { %692 = vsyncpa [#allocation3], 1 }
 0x1f6   :  { %693 = vsyncpa [#allocation6], 1 }
 0x1f7   :  { %694 = vsyncpa [#allocation9], 1 }
 0x1f8   :  { %695 = vsyncpa [#allocation4], 1 }

</bundles_post_ra>
